<compile_context>
chip_gen: v7x
topology: tpu7x:2x2x1
jax: 0.10.0
libtpu: 0.0.40
codegen_flags: <defaults>
</compile_context>

<pallas_src>
import math
from functools import partial

import jax
import jax.numpy as jnp
from jax.experimental import pallas as pl
from jax.experimental.pallas import tpu as pltpu


def _mlp_kernel(x_ref, w1_ref, b1_ref, w2_ref, b2_ref, w3_ref, b3_ref, o_ref):
    # Fused 3-layer MLP: matmuls on the MXU (f32 accumulation), bias + ReLU on
    # the VPU, no intermediate HBM round-trips. One batch tile per grid step.
    x = x_ref[...]
    h1 = jnp.dot(x, w1_ref[...], preferred_element_type=jnp.float32) + b1_ref[...]
    h1 = jnp.maximum(h1, 0.0)
    h2 = jnp.dot(h1, w2_ref[...], preferred_element_type=jnp.float32) + b2_ref[...]
    h2 = jnp.maximum(h2, 0.0)
    o_ref[...] = (
        jnp.dot(h2, w3_ref[...], preferred_element_type=jnp.float32) + b3_ref[...]
    )


def _round_up(x, m):
    return ((x + m - 1) // m) * m


@partial(jax.jit, static_argnames=())
def policy_network_forward(x, params):
    """x: (B, input_dim) float32.  Returns logits (B, output_dim) float32."""
    w1, b1, w2, b2, w3, b3 = params
    B, in_dim = x.shape
    H1 = w1.shape[1]          # 128
    H2 = w2.shape[1]          # 64
    out_dim = w3.shape[1]     # 2

    IN_PAD = _round_up(max(in_dim, 1), 8)      # sublane-aligned contraction
    OUT_PAD = _round_up(max(out_dim, 1), 128)  # lane-dense output slab

    # Batch tile: 512 rows of f32 activations (x+h1+h2+out ~ 0.55 MB) is far
    # under v7x's 32 MiB default scoped VMEM even with double buffering.
    TB = 512 if B >= 512 else _round_up(max(B, 1), 8)
    B_pad = _round_up(B, TB)

    # Zero-padded layouts (zeros in padded rows/cols leave real logits exact).
    xp = jnp.zeros((B_pad, IN_PAD), jnp.float32).at[:B, :in_dim].set(x)
    w1p = jnp.zeros((IN_PAD, H1), jnp.float32).at[:in_dim, :].set(w1)
    w3p = jnp.zeros((H2, OUT_PAD), jnp.float32).at[:, :out_dim].set(w3)
    b3p = jnp.zeros((1, OUT_PAD), jnp.float32).at[:, :out_dim].set(b3)

    resident = lambda i: (0, 0)   # weights/biases pinned in VMEM across steps

    out = pl.pallas_call(
        _mlp_kernel,
        out_shape=jax.ShapeDtypeStruct((B_pad, OUT_PAD), jnp.float32),
        grid=(B_pad // TB,),
        in_specs=[
            pl.BlockSpec((TB, IN_PAD), lambda i: (i, 0)),   # x tile
            pl.BlockSpec((IN_PAD, H1), resident),           # w1
            pl.BlockSpec((1, H1), resident),                # b1
            pl.BlockSpec((H1, H2), resident),               # w2
            pl.BlockSpec((1, H2), resident),                # b2
            pl.BlockSpec((H2, OUT_PAD), resident),          # w3 (lane-padded)
            pl.BlockSpec((1, OUT_PAD), resident),           # b3 (lane-padded)
        ],
        out_specs=pl.BlockSpec((TB, OUT_PAD), lambda i: (i, 0)),
        compiler_params=pltpu.CompilerParams(
            dimension_semantics=("parallel",),
        ),
    )(xp, w1p, b1, w2, b2, w3p, b3p)

    return out[:B, :out_dim]


def init_policy_params(key, input_dim, output_dim):
    """Deterministic init mimicking PyTorch nn.Linear defaults
    (uniform(-1/sqrt(fan_in), 1/sqrt(fan_in)) for both W and b).
    Weights stored as (in_features, out_features) so y = x @ W + b."""
    dims = [(input_dim, 128), (128, 64), (64, output_dim)]
    params = []
    for (fan_in, fan_out) in dims:
        key, kw, kb = jax.random.split(key, 3)
        bound = 1.0 / math.sqrt(fan_in)
        w = jax.random.uniform(
            kw, (fan_in, fan_out), jnp.float32, minval=-bound, maxval=bound
        )
        b = jax.random.uniform(
            kb, (1, fan_out), jnp.float32, minval=-bound, maxval=bound
        )
        params.extend([w, b])
    return tuple(params)


if __name__ == "__main__":
    # CartPole-v1: observation dim = 4, action dim = 2.
    input_dim, output_dim = 4, 2
    batch = 8

    key = jax.random.PRNGKey(0)
    key, kx = jax.random.split(key)
    x = jax.random.normal(kx, (batch, input_dim), dtype=jnp.float32)

    params = init_policy_params(key, input_dim, output_dim)

    logits = policy_network_forward(x, params)
    jax.block_until_ready(logits)

    # Pure-JAX reference check of the same forward pass.
    w1, b1, w2, b2, w3, b3 = params
    h1 = jnp.maximum(x @ w1 + b1, 0.0)
    h2 = jnp.maximum(h1 @ w2 + b2, 0.0)
    ref = h2 @ w3 + b3
    assert logits.shape == (batch, output_dim)
    assert jnp.allclose(logits, ref, atol=1e-5, rtol=1e-5)

    # Also exercise a larger, multi-tile batch to cover the gridded path.
    key, kx2 = jax.random.split(key)
    x_big = jax.random.normal(kx2, (1536, input_dim), dtype=jnp.float32)
    logits_big = policy_network_forward(x_big, params)
    jax.block_until_ready(logits_big)
    h1b = jnp.maximum(x_big @ w1 + b1, 0.0)
    h2b = jnp.maximum(h1b @ w2 + b2, 0.0)
    ref_big = h2b @ w3 + b3
    assert logits_big.shape == (1536, output_dim)
    assert jnp.allclose(logits_big, ref_big, atol=1e-5, rtol=1e-5)

    print("KERNEL_OK")
</pallas_src>

<mosaic_0001>
module attributes {stable_mosaic.version = 11 : i64} {
  func.func @_mlp_kernel(%arg0: i32, %arg1: memref<8x8xf32, #tpu.memory_space<vmem>>, %arg2: memref<8x128xf32, #tpu.memory_space<vmem>>, %arg3: memref<1x128xf32, #tpu.memory_space<vmem>>, %arg4: memref<128x64xf32, #tpu.memory_space<vmem>>, %arg5: memref<1x64xf32, #tpu.memory_space<vmem>>, %arg6: memref<64x128xf32, #tpu.memory_space<vmem>>, %arg7: memref<1x128xf32, #tpu.memory_space<vmem>>, %arg8: memref<8x128xf32, #tpu.memory_space<vmem>>) attributes {dimension_semantics = [#tpu.dimension_semantics<parallel>], iteration_bounds = array<i64: 1>, scalar_prefetch = 0 : i64, scratch_operands = 0 : i64, tpu.core_type = #tpu.core_type<tc>, window_params = [{transform_indices = @transform_0, window_bounds = array<i64: 8, 8>}, {pipeline_mode = #tpu.pipeline_mode<synchronous>, transform_indices = @transform_1, window_bounds = array<i64: 8, 128>}, {pipeline_mode = #tpu.pipeline_mode<synchronous>, transform_indices = @transform_2, window_bounds = array<i64: 1, 128>}, {pipeline_mode = #tpu.pipeline_mode<synchronous>, transform_indices = @transform_3, window_bounds = array<i64: 128, 64>}, {pipeline_mode = #tpu.pipeline_mode<synchronous>, transform_indices = @transform_4, window_bounds = array<i64: 1, 64>}, {pipeline_mode = #tpu.pipeline_mode<synchronous>, transform_indices = @transform_5, window_bounds = array<i64: 64, 128>}, {pipeline_mode = #tpu.pipeline_mode<synchronous>, transform_indices = @transform_6, window_bounds = array<i64: 1, 128>}, {transform_indices = @transform_7, window_bounds = array<i64: 8, 128>}]} {
    %c0 = arith.constant 0 : index
    %c0_0 = arith.constant 0 : index
    %0 = vector.load %arg1[%c0, %c0_0] : memref<8x8xf32, #tpu.memory_space<vmem>>, vector<8x8xf32>
    %c0_1 = arith.constant 0 : index
    %c0_2 = arith.constant 0 : index
    %1 = vector.load %arg2[%c0_1, %c0_2] : memref<8x128xf32, #tpu.memory_space<vmem>>, vector<8x128xf32>
    %cst = arith.constant dense<0.000000e+00> : vector<8x128xf32>
    %2 = tpu.matmul %0, %1, %cst {dimension_numbers = #tpu.dot_dimension_numbers<[1], [0], [0], [1], [0, 0, 1, 1], [], []>} : vector<8x8xf32>, vector<8x128xf32>, vector<8x128xf32> -> vector<8x128xf32>
    %c0_3 = arith.constant 0 : index
    %c0_4 = arith.constant 0 : index
    %3 = vector.load %arg3[%c0_3, %c0_4] : memref<1x128xf32, #tpu.memory_space<vmem>>, vector<1x128xf32>
    %4 = vector.broadcast %3 : vector<1x128xf32> to vector<8x128xf32>
    %5 = arith.addf %2, %4 : vector<8x128xf32>
    %cst_5 = arith.constant 0.000000e+00 : f32
    %6 = vector.broadcast %cst_5 : f32 to vector<8x128xf32>
    %7 = arith.maximumf %5, %6 : vector<8x128xf32>
    %c0_6 = arith.constant 0 : index
    %c0_7 = arith.constant 0 : index
    %8 = vector.load %arg4[%c0_6, %c0_7] : memref<128x64xf32, #tpu.memory_space<vmem>>, vector<128x64xf32>
    %cst_8 = arith.constant dense<0.000000e+00> : vector<8x64xf32>
    %9 = tpu.matmul %7, %8, %cst_8 {dimension_numbers = #tpu.dot_dimension_numbers<[1], [0], [0], [1], [0, 0, 1, 1], [], []>} : vector<8x128xf32>, vector<128x64xf32>, vector<8x64xf32> -> vector<8x64xf32>
    %c0_9 = arith.constant 0 : index
    %c0_10 = arith.constant 0 : index
    %10 = vector.load %arg5[%c0_9, %c0_10] : memref<1x64xf32, #tpu.memory_space<vmem>>, vector<1x64xf32>
    %11 = vector.broadcast %10 : vector<1x64xf32> to vector<8x64xf32>
    %12 = arith.addf %9, %11 : vector<8x64xf32>
    %cst_11 = arith.constant 0.000000e+00 : f32
    %13 = vector.broadcast %cst_11 : f32 to vector<8x64xf32>
    %14 = arith.maximumf %12, %13 : vector<8x64xf32>
    %c0_12 = arith.constant 0 : index
    %c0_13 = arith.constant 0 : index
    %15 = vector.load %arg6[%c0_12, %c0_13] : memref<64x128xf32, #tpu.memory_space<vmem>>, vector<64x128xf32>
    %cst_14 = arith.constant dense<0.000000e+00> : vector<8x128xf32>
    %16 = tpu.matmul %14, %15, %cst_14 {dimension_numbers = #tpu.dot_dimension_numbers<[1], [0], [0], [1], [0, 0, 1, 1], [], []>} : vector<8x64xf32>, vector<64x128xf32>, vector<8x128xf32> -> vector<8x128xf32>
    %c0_15 = arith.constant 0 : index
    %c0_16 = arith.constant 0 : index
    %17 = vector.load %arg7[%c0_15, %c0_16] : memref<1x128xf32, #tpu.memory_space<vmem>>, vector<1x128xf32>
    %18 = vector.broadcast %17 : vector<1x128xf32> to vector<8x128xf32>
    %19 = arith.addf %16, %18 : vector<8x128xf32>
    %c0_17 = arith.constant 0 : index
    %c0_18 = arith.constant 0 : index
    %20 = vector.load %arg8[%c0_17, %c0_18] : memref<8x128xf32, #tpu.memory_space<vmem>>, vector<8x128xf32>
    tpu.vector_store %arg8[%c0_17, %c0_18], %19 {strides = array<i32>} : memref<8x128xf32, #tpu.memory_space<vmem>>, vector<8x128xf32>,
    return
  }
  func.func @transform_0(%arg0: i32) -> (i32, i32) {
    %c0_i32 = arith.constant 0 : i32
    %c0_i32_0 = arith.constant 0 : i32
    return %arg0, %c0_i32 : i32, i32
  }
  func.func @transform_1(%arg0: i32) -> (i32, i32) {
    %c0_i32 = arith.constant 0 : i32
    %c0_i32_0 = arith.constant 0 : i32
    %c0_i32_1 = arith.constant 0 : i32
    return %c0_i32, %c0_i32_0 : i32, i32
  }
  func.func @transform_2(%arg0: i32) -> (i32, i32) {
    %c0_i32 = arith.constant 0 : i32
    %c0_i32_0 = arith.constant 0 : i32
    %c0_i32_1 = arith.constant 0 : i32
    return %c0_i32, %c0_i32_0 : i32, i32
  }
  func.func @transform_3(%arg0: i32) -> (i32, i32) {
    %c0_i32 = arith.constant 0 : i32
    %c0_i32_0 = arith.constant 0 : i32
    %c0_i32_1 = arith.constant 0 : i32
    return %c0_i32, %c0_i32_0 : i32, i32
  }
  func.func @transform_4(%arg0: i32) -> (i32, i32) {
    %c0_i32 = arith.constant 0 : i32
    %c0_i32_0 = arith.constant 0 : i32
    %c0_i32_1 = arith.constant 0 : i32
    return %c0_i32, %c0_i32_0 : i32, i32
  }
  func.func @transform_5(%arg0: i32) -> (i32, i32) {
    %c0_i32 = arith.constant 0 : i32
    %c0_i32_0 = arith.constant 0 : i32
    %c0_i32_1 = arith.constant 0 : i32
    return %c0_i32, %c0_i32_0 : i32, i32
  }
  func.func @transform_6(%arg0: i32) -> (i32, i32) {
    %c0_i32 = arith.constant 0 : i32
    %c0_i32_0 = arith.constant 0 : i32
    %c0_i32_1 = arith.constant 0 : i32
    return %c0_i32, %c0_i32_0 : i32, i32
  }
  func.func @transform_7(%arg0: i32) -> (i32, i32) {
    %c0_i32 = arith.constant 0 : i32
    %c0_i32_0 = arith.constant 0 : i32
    return %arg0, %c0_i32 : i32, i32
  }
}

</mosaic_0001>

<bundles_post_ra>
// kernel: policy_network_forward.1
= control target key start
LH: loop header
LB: loop body
LE: loop exit
PB: predicated region body
PF: predicated region fallthrough
CT: control target
= control target key end

     0   :  { %vm35_vm0 = vcmask 64512   ;;  %v429_v0 = vmov 0.0   ;;  %vm430_vm1 = vmmov 0   ;;  %v431_v4 = vmov 0.0|0.0   ;;  %s562_s1 = inlined_call_operand.vmem [shape: f32[8,128], index: 1, kind: input, shape index: {}]   ;;  %s563_s0 = inlined_call_operand.vmem [shape: f32[8,8], index: 0, kind: input, shape index: {}]   ;;  %s564_s3 = inlined_call_operand.vmem [shape: f32[128,64], index: 3, kind: input, shape index: {}]   ;;  %s565_s5 = inlined_call_operand.vmem [shape: f32[64,128], index: 5, kind: input, shape index: {}]   ;;  %s566_s2 = inlined_call_operand.vmem [shape: f32[1,128], index: 2, kind: input, shape index: {}]   ;;  %s567_s4 = inlined_call_operand.vmem [shape: f32[1,64], index: 4, kind: input, shape index: {}]   ;;  %s568_s6 = inlined_call_operand.vmem [shape: f32[1,128], index: 6, kind: input, shape index: {}]   ;;  %s569_s7 = inlined_call_operand.vmem [shape: f32[8,128], index: 7, kind: output, shape index: {}]  }
   0x1   :  { %331 = vmatprep.subr.mxu0 %v429_v0  ;;  %v27_v1 = vld [vmem:[%s562_s1] sm:$0xff]  ;;  %333 = vmatprep.mubr.msk.f32.mxu0 %vm430_vm1, %v429_v0  ;;  %v111_v5 = vld [vmem:[%s564_s3 + $0x8] sm:$0xff]  ;;  %v112_v6 = vld [vmem:[%s564_s3 + $0x10] sm:$0xff]  ;;  %vm219_vm2 = vcmask 523264  }
   0x2   :  { %v26_v2 = vld [vmem:[%s563_s0] sm:$0xff]  ;;  %332 = vmatpush3.msra.mxu0 %v27_v1  ;;  %390 = vmatprep.subr.bf16.mxu1 %v431_v4  ;;  %v113_v7 = vld [vmem:[%s564_s3 + $0x18] sm:$0xff]  ;;  %v115_v11 = vld [vmem:[%s564_s3 + $0x28] sm:$0xff] }
   0x3   :  { %v110_v3 = vld [vmem:[%s564_s3] sm:$0xff]  ;;  %334 = vmatmul.mubr.msk.f32.vlgmr.msra.gmra.mrb[0].mxu0 %vm35_vm0, %v26_v2  ;;  %368 = vmatprep.mubr.msk.f32.mxu1 %vm430_vm1, %v429_v0  ;;  %v394_v9 = vpack.c.bf16 %v113_v7, %v112_v6  ;;  %v116_v13 = vld [vmem:[%s564_s3 + $0x30] sm:$0xff]  ;;  %v117_v14 = vld [vmem:[%s564_s3 + $0x38] sm:$0xff] }
   0x4   :  { %v391_v8 = vpack.c.bf16 %v111_v5, %v110_v3  ;;  %414 = vmatprep.subr.bf16.mxu0 %v431_v4  ;;  %387 = vmatprep.mubr.msk.f32.mxu0 %vm430_vm1, %v429_v0  ;;  %v114_v10 = vld [vmem:[%s564_s3 + $0x20] sm:$0xff]  ;;  %v400_v15 = vpack.c.bf16 %v117_v14, %v116_v13  ;;  %v119_v17 = vld [vmem:[%s564_s3 + $0x48] sm:$0xff]  ;;  %v120_v19 = vld [vmem:[%s564_s3 + $0x50] sm:$0xff] }
   0x5   :  { %v397_v12 = vpack.c.bf16 %v115_v11, %v114_v10  ;;  %v118_v16 = vld [vmem:[%s564_s3 + $0x40] sm:$0xff]  ;;  %v121_v20 = vld [vmem:[%s564_s3 + $0x58] sm:$0xff]  ;;  %v123_v23 = vld [vmem:[%s564_s3 + $0x68] sm:$0xff] }
   0x6   :  { %392 = vmatpush3.bf16.msra.mxu1 %v391_v8  ;;  %v403_v18 = vpack.c.bf16 %v119_v17, %v118_v16  ;;  %v406_v21 = vpack.c.bf16 %v121_v20, %v120_v19  ;;  %v122_v22 = vld [vmem:[%s564_s3 + $0x60] sm:$0xff]  ;;  %v124_v25 = vld [vmem:[%s564_s3 + $0x70] sm:$0xff]  ;;  %v125_v26 = vld [vmem:[%s564_s3 + $0x78] sm:$0xff] }
   0x7   :  { %393 = vmatprep.subr.bf16.mxu1 %v431_v4  ;;  %v409_v24 = vpack.c.bf16 %v123_v23, %v122_v22  ;;  %v412_v27 = vpack.c.bf16 %v125_v26, %v124_v25  ;;  %v204_v28 = vld [vmem:[%s565_s5] sm:$0xff]  ;;  %v205_v29 = vld [vmem:[%s565_s5 + $0x8] sm:$0xff]  ;;  %v206_v30 = vld [vmem:[%s565_s5 + $0x10] sm:$0xff] }
   0x8   :  { %v415_v31 = vpack.c.bf16 %v205_v29, %v204_v28  ;;  %v207_v32 = vld [vmem:[%s565_s5 + $0x18] sm:$0xff]  ;;  %v208_v34 = vld [vmem:[%s565_s5 + $0x20] sm:$0xff]  ;;  %v209_v35 = vld [vmem:[%s565_s5 + $0x28] sm:$0xff] }
   0x9   :  { %v418_v33 = vpack.c.bf16 %v207_v32, %v206_v30  ;;  %v421_v36 = vpack.c.bf16 %v209_v35, %v208_v34  ;;  %v298_v37 = vld [vmem:[%s566_s2] ss:$0 sm:$0xff]  ;;  %v210_v42 = vld [vmem:[%s565_s5 + $0x30] sm:$0xff]  ;;  %v211_v43 = vld [vmem:[%s565_s5 + $0x38] sm:$0xff] }
   0xa   :  { %395 = vmatpush3.bf16.msra.mxu1 %v394_v9  ;;  %416 = vmatpush3.bf16.msra.mxu0 %v415_v31  ;;  %v424_v44 = vpack.c.bf16 %v211_v43, %v210_v42  ;;  %v300_v45 = vld [vmem:[%s567_s4] ss:$0 sm:$0xff] }
   0xb   :  { %396 = vmatprep.subr.bf16.mxu1 %v431_v4  ;;  %417 = vmatprep.subr.bf16.mxu0 %v431_v4  ;;  %v301_v50 = vld [vmem:[%s568_s6] ss:$0 sm:$0xff] }
   0xe   :  { %398 = vmatpush3.bf16.msra.mxu1 %v397_v12  ;;  %419 = vmatpush3.bf16.msra.mxu0 %v418_v33 }
   0xf   :  { %399 = vmatprep.subr.bf16.mxu1 %v431_v4  ;;  %420 = vmatprep.subr.bf16.mxu0 %v431_v4 }
  0x12   :  { %401 = vmatpush3.bf16.msra.mxu1 %v400_v15  ;;  %422 = vmatpush3.bf16.msra.mxu0 %v421_v36 }
  0x13   :  { %402 = vmatprep.subr.bf16.mxu1 %v431_v4  ;;  %423 = vmatprep.subr.bf16.mxu0 %v431_v4 }
  0x16   :  { %404 = vmatpush3.bf16.msra.mxu1 %v403_v18  ;;  %425 = vmatpush3.bf16.msra.mxu0 %v424_v44 }
  0x17   :  { %405 = vmatprep.subr.bf16.mxu1 %v431_v4 }
  0x1a   :  { %407 = vmatpush3.bf16.msra.mxu1 %v406_v21 }
  0x1b   :  { %408 = vmatprep.subr.bf16.mxu1 %v431_v4 }
  0x1e   :  { %410 = vmatpush3.bf16.msra.mxu1 %v409_v24 }
  0x1f   :  { %411 = vmatprep.subr.bf16.mxu1 %v431_v4 }
  0x22   :  { %413 = vmatpush3.bf16.msra.mxu1 %v412_v27 }
  0xd6   :  { %v105_v38 = vpop.f32.mrb[0].mxu0 }
  0xd7   :  { %v106_v39 = vadd.f32 %v298_v37, %v105_v38  ;;  %v335_v40 = vpop.f32.mrb[1].mxu0 }
  0xd9   :  { %v109_v41 = vmax.f32 %v106_v39, 0.0 }
  0xdb   :  { %369 = vmatmul.mubr.f32.vlgmr.msra.gmra.mrb[0].mxu1 %v109_v41 }
 0x1ae   :  { %v199_v46 = vpop.f32.mrb[0].mxu1 }
 0x1af   :  { %v200_v47 = vadd.f32 %v300_v45, %v199_v46  ;;  %v370_v48 = vpop.f32.mrb[1].mxu1 }
 0x1b1   :  { %v203_v49 = vmax.f32 %v200_v47, 0.0 }
 0x1b3   :  { %388 = vmatmul.mubr.msk.f32.vlgmr.msra.gmra.mrb[2].mxu0 %vm219_vm2, %v203_v49 }
 0x286   :  { %v289_v51 = vpop.f32.mrb[2].mxu0 }
 0x287   :  { %v290_v52 = vadd.f32 %v301_v50, %v289_v51  ;;  %v389_v53 = vpop.f32.mrb[3].mxu0 }
 0x289   :  { %293 = vst [vmem:[%s569_s7] sm:$0xff] %v290_v52 }

</bundles_post_ra>
